<compile_context>
chip_gen: v6e
topology: v6e:2x2x1
jax: 0.10.0
libtpu: 0.0.40
codegen_flags: <defaults>
</compile_context>

<pallas_src>
import jax
import jax.numpy as jnp
from jax import lax
from jax.experimental import pallas as pl
from jax.experimental.pallas import tpu as pltpu

_EPS = 1e-05
_LANES = 128
_TARGET_BLOCK_BYTES = 4 << 20      # per-input per-grid-step DMA block (~4 MiB)
_NUM_SLICES = 2                    # leading "parallel" axis (both TCs on v7x)
_MIN_ROWS_FOR_SLICING = 2048       # below this the second slice is overhead
_UNROLL = 8                        # sub-blocks processed per fori iteration


def _cdiv(a, b):
    return -(-a // b)


def _round_up(a, m):
    return _cdiv(a, m) * m


def _make_moment_kernel(tile_rows, sub_rows, steps_per_slice, rows_valid, needs_mask):
    """Streaming accumulator for sum(y), sum(yp), sum(y*y), sum(yp*yp), sum(y*yp).

    All five per-lane (8,128) accumulators live directly in the output block,
    which is resident across the "arbitrary" step axis.
    """
    n_sub = tile_rows // sub_rows          # sub-blocks per grid step
    packs = sub_rows // 8                  # (8,128) vreg groups per sub-block
    unroll = min(_UNROLL, n_sub)
    main_trips = n_sub // unroll
    rem = n_sub - main_trips * unroll

    def kernel(y_ref, yp_ref, o_ref):
        c = pl.program_id(0)
        s = pl.program_id(1)

        @pl.when(s == 0)
        def _init():
            o_ref[...] = jnp.zeros_like(o_ref)

        if needs_mask:
            start_row = (c * steps_per_slice + s) * tile_rows
            row_off = (lax.broadcasted_iota(jnp.int32, (packs, 8, _LANES), 0) * 8
                       + lax.broadcasted_iota(jnp.int32, (packs, 8, _LANES), 1))

        def accumulate(r0, accs):
            a0, a1, a2, a3, a4 = accs
            # One load per input vreg group; cast to f32 in-kernel so narrow
            # dtypes DMA half the bytes.  Reshape is a tile-aligned relabel.
            yv = y_ref[pl.ds(r0, sub_rows), :].astype(jnp.float32)
            ypv = yp_ref[pl.ds(r0, sub_rows), :].astype(jnp.float32)
            yv = yv.reshape(packs, 8, _LANES)
            ypv = ypv.reshape(packs, 8, _LANES)
            if needs_mask:
                valid = (start_row + r0 + row_off) < rows_valid
                yv = jnp.where(valid, yv, 0.0)
                ypv = jnp.where(valid, ypv, 0.0)
            a0 = a0 + jnp.sum(yv, axis=0)
            a1 = a1 + jnp.sum(ypv, axis=0)
            a2 = a2 + jnp.sum(yv * yv, axis=0)
            a3 = a3 + jnp.sum(ypv * ypv, axis=0)
            a4 = a4 + jnp.sum(yv * ypv, axis=0)
            return (a0, a1, a2, a3, a4)

        zero = jnp.zeros((8, _LANES), jnp.float32)
        accs = (zero, zero, zero, zero, zero)

        if main_trips > 0:
            def body(g, carry):
                base = pl.multiple_of(g * (unroll * sub_rows), sub_rows)
                for k in range(unroll):
                    carry = accumulate(base + k * sub_rows, carry)
                return carry
            accs = lax.fori_loop(0, main_trips, body, accs)

        for k in range(rem):                      # static leftover sub-blocks
            accs = accumulate((main_trips * unroll + k) * sub_rows, accs)

        o_ref[0, 0] += accs[0]
        o_ref[0, 1] += accs[1]
        o_ref[0, 2] += accs[2]
        o_ref[0, 3] += accs[3]
        o_ref[0, 4] += accs[4]

    return kernel


@jax.jit
def ssim_correlation_loss(y, yp):
    """Pallas TPU implementation of SSIMCorrelationLoss.forward."""
    y_flat = jnp.ravel(y)
    yp_flat = jnp.ravel(yp)
    n = y_flat.shape[0]
    assert yp_flat.shape[0] == n

    if n % _LANES != 0 or n < 8 * _LANES:
        # Small or lane-unaligned inputs: a single fused XLA pass is already
        # zero-copy and memory-optimal; a Pallas grid here is pure overhead.
        # TODO(synk): a manual-DMA 1-D kernel could cover lane-unaligned n
        # without any copy if these sizes ever matter for performance.
        y32 = y_flat.astype(jnp.float32)
        yp32 = yp_flat.astype(jnp.float32)
        my = jnp.mean(y32)
        myp = jnp.mean(yp32)
        yc = y32 - my
        ypc = yp32 - myp
        inv_nm1 = 1.0 / jnp.float32(n - 1)        # n == 1 -> nan, like PyTorch
        s2y = jnp.dot(yc, yc) * inv_nm1
        s2yp = jnp.dot(ypc, ypc) * inv_nm1
        syyp = jnp.dot(yc, ypc) * inv_nm1
        luminance = (2.0 * my * myp + _EPS) / (my * my + myp * myp + _EPS)
        structure = (2.0 * syyp + _EPS) / (s2y + s2yp + _EPS)
        return -(luminance * structure)

    rows = n // _LANES
    itemsize = max(jnp.dtype(y_flat.dtype).itemsize, jnp.dtype(yp_flat.dtype).itemsize)
    sub_rows = 8 * max(1, 4 // itemsize)          # one f32 vreg group per load
    target_rows = max(
        sub_rows,
        (_TARGET_BLOCK_BYTES // (_LANES * itemsize)) // sub_rows * sub_rows)

    num_slices = _NUM_SLICES if rows >= _MIN_ROWS_FOR_SLICING else 1
    steps_per_slice = max(1, _cdiv(rows, num_slices * target_rows))
    tile_rows = min(target_rows,
                    _round_up(_cdiv(rows, num_slices * steps_per_slice), sub_rows))
    needs_mask = num_slices * steps_per_slice * tile_rows != rows

    y2d = y_flat.reshape(rows, _LANES)            # zero-copy view (n % 128 == 0)
    yp2d = yp_flat.reshape(rows, _LANES)

    block_bytes = tile_rows * _LANES * itemsize
    # 2 inputs x 2 pipeline buffers + output/compiler headroom.
    vmem_limit = int(4 * block_bytes + (6 << 20))

    def in_map(c, s):
        return (c * steps_per_slice + s, 0)

    kernel = _make_moment_kernel(tile_rows, sub_rows, steps_per_slice, rows, needs_mask)

    partial = pl.pallas_call(
        kernel,
        out_shape=jax.ShapeDtypeStruct((num_slices, 5, 8, _LANES), jnp.float32),
        grid=(num_slices, steps_per_slice),
        in_specs=[
            pl.BlockSpec((tile_rows, _LANES), in_map),
            pl.BlockSpec((tile_rows, _LANES), in_map),
        ],
        out_specs=pl.BlockSpec((1, 5, 8, _LANES), lambda c, s: (c, 0, 0, 0)),
        compiler_params=pltpu.CompilerParams(
            # TODO(synk): on v7x verify the leading axis shards across both
            # TensorCores (xprof); if not, switch it to pltpu.CORE_PARALLEL.
            dimension_semantics=("parallel", "arbitrary"),
            vmem_limit_bytes=vmem_limit,
        ),
        cost_estimate=pl.CostEstimate(
            flops=8 * n,
            transcendentals=0,
            bytes_accessed=int(2 * n * itemsize + num_slices * 5 * 8 * _LANES * 4),
        ),
    )(y2d, yp2d)

    # Tiny epilogue: combine per-slice / per-lane partials, evaluate SSIM.
    m = jnp.sum(partial, axis=(0, 2, 3))          # (5,)
    nf = jnp.float32(n)
    my = m[0] / nf
    myp = m[1] / nf
    inv_nm1 = 1.0 / (nf - 1.0)
    # TODO(synk): single-pass moments cancel when mean^2 >> variance at very
    # large N; switch to a pre-centered / compensated accumulation if needed.
    s2y = (m[2] - nf * my * my) * inv_nm1
    s2yp = (m[3] - nf * myp * myp) * inv_nm1
    syyp = (m[4] - nf * my * myp) * inv_nm1
    luminance = (2.0 * my * myp + _EPS) / (my * my + myp * myp + _EPS)
    structure = (2.0 * syyp + _EPS) / (s2y + s2yp + _EPS)
    return -(luminance * structure)


def _reference(y, yp):
    """Pure-JAX reference matching the PyTorch module."""
    y = jnp.ravel(y).astype(jnp.float32)
    yp = jnp.ravel(yp).astype(jnp.float32)
    n = y.shape[0]
    my = jnp.mean(y)
    myp = jnp.mean(yp)
    yc = y - my
    ypc = yp - myp
    s2y = jnp.dot(yc, yc) / (n - 1)
    s2yp = jnp.dot(ypc, ypc) / (n - 1)
    syyp = jnp.dot(yc, ypc) / (n - 1)
    S = (2 * my * myp + _EPS) / (my ** 2 + myp ** 2 + _EPS) * (
        (2 * syyp + _EPS) / (s2y + s2yp + _EPS))
    return -S


if __name__ == "__main__":
    key = jax.random.PRNGKey(0)
    k1, k2, k3, k4 = jax.random.split(key, 4)

    # Primary case: NCHW inputs as the PyTorch module would see them.
    y = jax.random.uniform(k1, (2, 4, 16, 16), dtype=jnp.float32)
    yp = y + 0.1 * jax.random.normal(k2, (2, 4, 16, 16), dtype=jnp.float32)
    loss = jax.block_until_ready(ssim_correlation_loss(y, yp))
    ref = _reference(y, yp)
    assert jnp.allclose(loss, ref, rtol=1e-3, atol=1e-5), (loss, ref)

    # Row-count not divisible by the tiling: exercises the in-kernel row mask
    # and both grid slices (still a small ~1.2 MB input).
    y2 = jax.random.uniform(k3, (9, 137, 2, 128), dtype=jnp.float32)
    yp2 = y2 + 0.05 * jax.random.normal(k4, (9, 137, 2, 128), dtype=jnp.float32)
    loss2 = jax.block_until_ready(ssim_correlation_loss(y2, yp2))
    ref2 = _reference(y2, yp2)
    assert jnp.allclose(loss2, ref2, rtol=1e-3, atol=1e-5), (loss2, ref2)

    # Lane-unaligned element count -> fused zero-copy XLA fallback path.
    y3 = jax.random.uniform(k1, (2, 4, 15, 17), dtype=jnp.float32)
    yp3 = y3 + 0.1 * jax.random.normal(k2, (2, 4, 15, 17), dtype=jnp.float32)
    loss3 = jax.block_until_ready(ssim_correlation_loss(y3, yp3))
    ref3 = _reference(y3, yp3)
    assert jnp.allclose(loss3, ref3, rtol=1e-3, atol=1e-5), (loss3, ref3)

    print("KERNEL_OK")
</pallas_src>

<mosaic_0001>
module attributes {stable_mosaic.version = 11 : i64} {
  func.func @kernel(%arg0: i32, %arg1: i32, %arg2: memref<16x128xf32, #tpu.memory_space<vmem>>, %arg3: memref<16x128xf32, #tpu.memory_space<vmem>>, %arg4: memref<1x5x8x128xf32, #tpu.memory_space<vmem>>) attributes {dimension_semantics = [#tpu.dimension_semantics<parallel>, #tpu.dimension_semantics<arbitrary>], iteration_bounds = array<i64: 1, 1>, scalar_prefetch = 0 : i64, scratch_operands = 0 : i64, tpu.core_type = #tpu.core_type<tc>, window_params = [{transform_indices = @transform_0, window_bounds = array<i64: 16, 128>}, {transform_indices = @transform_1, window_bounds = array<i64: 16, 128>}, {transform_indices = @transform_2, window_bounds = array<i64: 1, 5, 8, 128>}]} {
    %c0_i32 = arith.constant 0 : i32
    %0 = arith.cmpi eq, %arg1, %c0_i32 : i32
    %1 = arith.extui %0 : i1 to i32
    %c0_i32_0 = arith.constant 0 : i32
    %2 = arith.cmpi ne, %1, %c0_i32_0 : i32
    scf.if %2 {
      %cst_52 = arith.constant 0.000000e+00 : f32
      %76 = vector.broadcast %cst_52 : f32 to vector<1x5x8x128xf32>
      %c0_53 = arith.constant 0 : index
      %c0_54 = arith.constant 0 : index
      %c0_55 = arith.constant 0 : index
      %c0_56 = arith.constant 0 : index
      %77 = vector.load %arg4[%c0_53, %c0_54, %c0_55, %c0_56] : memref<1x5x8x128xf32, #tpu.memory_space<vmem>>, vector<1x5x8x128xf32>
      tpu.vector_store %arg4[%c0_53, %c0_54, %c0_55, %c0_56], %76 {strides = array<i32>} : memref<1x5x8x128xf32, #tpu.memory_space<vmem>>, vector<1x5x8x128xf32>,
    } else {
    }
    %cst = arith.constant 0.000000e+00 : f32
    %3 = vector.broadcast %cst : f32 to vector<8x128xf32>
    %c0_i32_1 = arith.constant 0 : i32
    %c16_i32 = arith.constant 16 : i32
    %4 = arith.muli %c0_i32_1, %c16_i32 : i32
    %5 = tpu.assume_multiple %4, 8 : i32
    %c0_i32_2 = arith.constant 0 : i32
    %6 = arith.addi %5, %c0_i32_2 : i32
    %7 = arith.index_cast %6 : i32 to index
    %c0 = arith.constant 0 : index
    %8 = vector.load %arg2[%7, %c0] : memref<16x128xf32, #tpu.memory_space<vmem>>, vector<8x128xf32>
    %9 = arith.index_cast %6 : i32 to index
    %c0_3 = arith.constant 0 : index
    %10 = vector.load %arg3[%9, %c0_3] : memref<16x128xf32, #tpu.memory_space<vmem>>, vector<8x128xf32>
    %11 = vector.shape_cast %8 : vector<8x128xf32> to vector<1x8x128xf32>
    %12 = vector.shape_cast %10 : vector<8x128xf32> to vector<1x8x128xf32>
    %cst_4 = arith.constant dense<0.000000e+00> : vector<8x128xf32>
    %13 = vector.multi_reduction <add>, %11, %cst_4 [0] : vector<1x8x128xf32> to vector<8x128xf32>
    %14 = arith.addf %3, %13 : vector<8x128xf32>
    %cst_5 = arith.constant dense<0.000000e+00> : vector<8x128xf32>
    %15 = vector.multi_reduction <add>, %12, %cst_5 [0] : vector<1x8x128xf32> to vector<8x128xf32>
    %16 = arith.addf %3, %15 : vector<8x128xf32>
    %17 = arith.mulf %11, %11 : vector<1x8x128xf32>
    %cst_6 = arith.constant dense<0.000000e+00> : vector<8x128xf32>
    %18 = vector.multi_reduction <add>, %17, %cst_6 [0] : vector<1x8x128xf32> to vector<8x128xf32>
    %19 = arith.addf %3, %18 : vector<8x128xf32>
    %20 = arith.mulf %12, %12 : vector<1x8x128xf32>
    %cst_7 = arith.constant dense<0.000000e+00> : vector<8x128xf32>
    %21 = vector.multi_reduction <add>, %20, %cst_7 [0] : vector<1x8x128xf32> to vector<8x128xf32>
    %22 = arith.addf %3, %21 : vector<8x128xf32>
    %23 = arith.mulf %11, %12 : vector<1x8x128xf32>
    %cst_8 = arith.constant dense<0.000000e+00> : vector<8x128xf32>
    %24 = vector.multi_reduction <add>, %23, %cst_8 [0] : vector<1x8x128xf32> to vector<8x128xf32>
    %25 = arith.addf %3, %24 : vector<8x128xf32>
    %c8_i32 = arith.constant 8 : i32
    %26 = arith.addi %5, %c8_i32 : i32
    %27 = arith.index_cast %26 : i32 to index
    %c0_9 = arith.constant 0 : index
    %28 = vector.load %arg2[%27, %c0_9] : memref<16x128xf32, #tpu.memory_space<vmem>>, vector<8x128xf32>
    %29 = arith.index_cast %26 : i32 to index
    %c0_10 = arith.constant 0 : index
    %30 = vector.load %arg3[%29, %c0_10] : memref<16x128xf32, #tpu.memory_space<vmem>>, vector<8x128xf32>
    %31 = vector.shape_cast %28 : vector<8x128xf32> to vector<1x8x128xf32>
    %32 = vector.shape_cast %30 : vector<8x128xf32> to vector<1x8x128xf32>
    %cst_11 = arith.constant dense<0.000000e+00> : vector<8x128xf32>
    %33 = vector.multi_reduction <add>, %31, %cst_11 [0] : vector<1x8x128xf32> to vector<8x128xf32>
    %34 = arith.addf %14, %33 : vector<8x128xf32>
    %cst_12 = arith.constant dense<0.000000e+00> : vector<8x128xf32>
    %35 = vector.multi_reduction <add>, %32, %cst_12 [0] : vector<1x8x128xf32> to vector<8x128xf32>
    %36 = arith.addf %16, %35 : vector<8x128xf32>
    %37 = arith.mulf %31, %31 : vector<1x8x128xf32>
    %cst_13 = arith.constant dense<0.000000e+00> : vector<8x128xf32>
    %38 = vector.multi_reduction <add>, %37, %cst_13 [0] : vector<1x8x128xf32> to vector<8x128xf32>
    %39 = arith.addf %19, %38 : vector<8x128xf32>
    %40 = arith.mulf %32, %32 : vector<1x8x128xf32>
    %cst_14 = arith.constant dense<0.000000e+00> : vector<8x128xf32>
    %41 = vector.multi_reduction <add>, %40, %cst_14 [0] : vector<1x8x128xf32> to vector<8x128xf32>
    %42 = arith.addf %22, %41 : vector<8x128xf32>
    %43 = arith.mulf %31, %32 : vector<1x8x128xf32>
    %cst_15 = arith.constant dense<0.000000e+00> : vector<8x128xf32>
    %44 = vector.multi_reduction <add>, %43, %cst_15 [0] : vector<1x8x128xf32> to vector<8x128xf32>
    %45 = arith.addf %25, %44 : vector<8x128xf32>
    %c1_i32 = arith.constant 1 : i32
    %c0_16 = arith.constant 0 : index
    %c0_17 = arith.constant 0 : index
    %c0_18 = arith.constant 0 : index
    %c0_19 = arith.constant 0 : index
    %46 = vector.load %arg4[%c0_16, %c0_17, %c0_18, %c0_19] : memref<1x5x8x128xf32, #tpu.memory_space<vmem>>, vector<1x1x8x128xf32>
    %47 = vector.shape_cast %46 : vector<1x1x8x128xf32> to vector<8x128xf32>
    %48 = arith.addf %47, %34 : vector<8x128xf32>
    %c0_20 = arith.constant 0 : index
    %c0_21 = arith.constant 0 : index
    %c0_22 = arith.constant 0 : index
    %c0_23 = arith.constant 0 : index
    %49 = vector.load %arg4[%c0_20, %c0_21, %c0_22, %c0_23] : memref<1x5x8x128xf32, #tpu.memory_space<vmem>>, vector<1x1x8x128xf32>
    %50 = vector.shape_cast %49 : vector<1x1x8x128xf32> to vector<8x128xf32>
    %51 = vector.shape_cast %48 : vector<8x128xf32> to vector<1x1x8x128xf32>
    tpu.vector_store %arg4[%c0_20, %c0_21, %c0_22, %c0_23], %51 {strides = array<i32>} : memref<1x5x8x128xf32, #tpu.memory_space<vmem>>, vector<1x1x8x128xf32>,
    %c0_24 = arith.constant 0 : index
    %c1 = arith.constant 1 : index
    %c0_25 = arith.constant 0 : index
    %c0_26 = arith.constant 0 : index
    %52 = vector.load %arg4[%c0_24, %c1, %c0_25, %c0_26] : memref<1x5x8x128xf32, #tpu.memory_space<vmem>>, vector<1x1x8x128xf32>
    %53 = vector.shape_cast %52 : vector<1x1x8x128xf32> to vector<8x128xf32>
    %54 = arith.addf %53, %36 : vector<8x128xf32>
    %c0_27 = arith.constant 0 : index
    %c1_28 = arith.constant 1 : index
    %c0_29 = arith.constant 0 : index
    %c0_30 = arith.constant 0 : index
    %55 = vector.load %arg4[%c0_27, %c1_28, %c0_29, %c0_30] : memref<1x5x8x128xf32, #tpu.memory_space<vmem>>, vector<1x1x8x128xf32>
    %56 = vector.shape_cast %55 : vector<1x1x8x128xf32> to vector<8x128xf32>
    %57 = vector.shape_cast %54 : vector<8x128xf32> to vector<1x1x8x128xf32>
    tpu.vector_store %arg4[%c0_27, %c1_28, %c0_29, %c0_30], %57 {strides = array<i32>} : memref<1x5x8x128xf32, #tpu.memory_space<vmem>>, vector<1x1x8x128xf32>,
    %c0_31 = arith.constant 0 : index
    %c2 = arith.constant 2 : index
    %c0_32 = arith.constant 0 : index
    %c0_33 = arith.constant 0 : index
    %58 = vector.load %arg4[%c0_31, %c2, %c0_32, %c0_33] : memref<1x5x8x128xf32, #tpu.memory_space<vmem>>, vector<1x1x8x128xf32>
    %59 = vector.shape_cast %58 : vector<1x1x8x128xf32> to vector<8x128xf32>
    %60 = arith.addf %59, %39 : vector<8x128xf32>
    %c0_34 = arith.constant 0 : index
    %c2_35 = arith.constant 2 : index
    %c0_36 = arith.constant 0 : index
    %c0_37 = arith.constant 0 : index
    %61 = vector.load %arg4[%c0_34, %c2_35, %c0_36, %c0_37] : memref<1x5x8x128xf32, #tpu.memory_space<vmem>>, vector<1x1x8x128xf32>
    %62 = vector.shape_cast %61 : vector<1x1x8x128xf32> to vector<8x128xf32>
    %63 = vector.shape_cast %60 : vector<8x128xf32> to vector<1x1x8x128xf32>
    tpu.vector_store %arg4[%c0_34, %c2_35, %c0_36, %c0_37], %63 {strides = array<i32>} : memref<1x5x8x128xf32, #tpu.memory_space<vmem>>, vector<1x1x8x128xf32>,
    %c0_38 = arith.constant 0 : index
    %c3 = arith.constant 3 : index
    %c0_39 = arith.constant 0 : index
    %c0_40 = arith.constant 0 : index
    %64 = vector.load %arg4[%c0_38, %c3, %c0_39, %c0_40] : memref<1x5x8x128xf32, #tpu.memory_space<vmem>>, vector<1x1x8x128xf32>
    %65 = vector.shape_cast %64 : vector<1x1x8x128xf32> to vector<8x128xf32>
    %66 = arith.addf %65, %42 : vector<8x128xf32>
    %c0_41 = arith.constant 0 : index
    %c3_42 = arith.constant 3 : index
    %c0_43 = arith.constant 0 : index
    %c0_44 = arith.constant 0 : index
    %67 = vector.load %arg4[%c0_41, %c3_42, %c0_43, %c0_44] : memref<1x5x8x128xf32, #tpu.memory_space<vmem>>, vector<1x1x8x128xf32>
    %68 = vector.shape_cast %67 : vector<1x1x8x128xf32> to vector<8x128xf32>
    %69 = vector.shape_cast %66 : vector<8x128xf32> to vector<1x1x8x128xf32>
    tpu.vector_store %arg4[%c0_41, %c3_42, %c0_43, %c0_44], %69 {strides = array<i32>} : memref<1x5x8x128xf32, #tpu.memory_space<vmem>>, vector<1x1x8x128xf32>,
    %c0_45 = arith.constant 0 : index
    %c4 = arith.constant 4 : index
    %c0_46 = arith.constant 0 : index
    %c0_47 = arith.constant 0 : index
    %70 = vector.load %arg4[%c0_45, %c4, %c0_46, %c0_47] : memref<1x5x8x128xf32, #tpu.memory_space<vmem>>, vector<1x1x8x128xf32>
    %71 = vector.shape_cast %70 : vector<1x1x8x128xf32> to vector<8x128xf32>
    %72 = arith.addf %71, %45 : vector<8x128xf32>
    %c0_48 = arith.constant 0 : index
    %c4_49 = arith.constant 4 : index
    %c0_50 = arith.constant 0 : index
    %c0_51 = arith.constant 0 : index
    %73 = vector.load %arg4[%c0_48, %c4_49, %c0_50, %c0_51] : memref<1x5x8x128xf32, #tpu.memory_space<vmem>>, vector<1x1x8x128xf32>
    %74 = vector.shape_cast %73 : vector<1x1x8x128xf32> to vector<8x128xf32>
    %75 = vector.shape_cast %72 : vector<8x128xf32> to vector<1x1x8x128xf32>
    tpu.vector_store %arg4[%c0_48, %c4_49, %c0_50, %c0_51], %75 {strides = array<i32>} : memref<1x5x8x128xf32, #tpu.memory_space<vmem>>, vector<1x1x8x128xf32>,
    return
  }
  func.func @transform_0(%arg0: i32, %arg1: i32) -> (i32, i32) {
    %c1_i32 = arith.constant 1 : i32
    %0 = arith.muli %arg0, %c1_i32 : i32
    %1 = arith.addi %0, %arg1 : i32
    %c0_i32 = arith.constant 0 : i32
    %c0_i32_0 = arith.constant 0 : i32
    return %1, %c0_i32 : i32, i32
  }
  func.func @transform_1(%arg0: i32, %arg1: i32) -> (i32, i32) {
    %c1_i32 = arith.constant 1 : i32
    %0 = arith.muli %arg0, %c1_i32 : i32
    %1 = arith.addi %0, %arg1 : i32
    %c0_i32 = arith.constant 0 : i32
    %c0_i32_0 = arith.constant 0 : i32
    return %1, %c0_i32 : i32, i32
  }
  func.func @transform_2(%arg0: i32, %arg1: i32) -> (i32, i32, i32, i32) {
    %c0_i32 = arith.constant 0 : i32
    %c0_i32_0 = arith.constant 0 : i32
    %c0_i32_1 = arith.constant 0 : i32
    %c0_i32_2 = arith.constant 0 : i32
    return %arg0, %c0_i32, %c0_i32_0, %c0_i32_1 : i32, i32, i32, i32
  }
}

</mosaic_0001>

<bundles_post_ra>
// kernel: ssim_correlation_loss.1
= control target key start
LH: loop header
LB: loop body
LE: loop exit
PB: predicated region body
PF: predicated region fallthrough
CT: control target
= control target key end

     0   :  { %s187_s0 = inlined_call_operand.vmem [shape: f32[16,128], index: 0, kind: input, shape index: {}]   ;;  %s188_s1 = inlined_call_operand.vmem [shape: f32[16,128], index: 1, kind: input, shape index: {}]   ;;  %s189_s2 = inlined_call_operand.vmem [shape: f32[1,5,8,128], index: 2, kind: output, shape index: {}]  }
   0x1   :  { %v64_v0 = vld [vmem:[%s187_s0] sm:$0xff]  ;;  %v134_v1 = vld [vmem:[%s187_s0 + $0x8] sm:$0xff] }
   0x2   :  { %v65_v2 = vld [vmem:[%s188_s1] sm:$0xff]  ;;  %v85_v3 = vadd.f32 %v134_v1, %v64_v0  ;;  %v135_v4 = vld [vmem:[%s188_s1 + $0x8] sm:$0xff]  ;;  %v70_v5 = vmul.f32 %v64_v0, %v64_v0  ;;  %v88_v6 = vmul.f32 %v134_v1, %v134_v1 }
   0x3   :  { %v73_v7 = vmul.f32 %v65_v2, %v65_v2  ;;  %v87_v8 = vadd.f32 %v135_v4, %v65_v2  ;;  %v91_v9 = vmul.f32 %v135_v4, %v135_v4  ;;  %v76_v10 = vmul.f32 %v65_v2, %v64_v0 }
   0x4   :  { %v94_v11 = vmul.f32 %v135_v4, %v134_v1  ;;  %v90_v12 = vadd.f32 %v88_v6, %v70_v5  ;;  %99 = vst [vmem:[%s189_s2] sm:$0xff] %v85_v3 }
   0x5   :  { %v93_v13 = vadd.f32 %v91_v9, %v73_v7  ;;  %137 = vst [vmem:[%s189_s2 + $0x8] sm:$0xff] %v87_v8 }
   0x6   :  { %v96_v14 = vadd.f32 %v94_v11, %v76_v10  ;;  %139 = vst [vmem:[%s189_s2 + $0x10] sm:$0xff] %v90_v12 }
   0x7   :  { %141 = vst [vmem:[%s189_s2 + $0x18] sm:$0xff] %v93_v13 }
   0x8   :  { %143 = vst [vmem:[%s189_s2 + $0x20] sm:$0xff] %v96_v14 }

</bundles_post_ra>
